<compile_context>
chip_gen: v5e
topology: v5e:2x2
jax: 0.10.0
libtpu: 0.0.40
codegen_flags: <defaults>
</compile_context>

<pallas_src>
import math

import numpy as np
import jax
import jax.numpy as jnp
from jax.experimental import pallas as pl
from jax.experimental.pallas import tpu as pltpu

LARGE = 1000.0
LR = 0.3
COUNT_NB_GREATER_THAN = 3.0
SCALE = 48.0                        # == BATCH_SIZE in the torch script
SMALLEST_INT = -1000
BIGGEST_INT = 1000
DELTA_SCALE = math.sqrt(1.0 / (LR * 2.0))

K_CHUNK = 32                        # offsets per chunk (per-chunk temps ~8-16 vregs)
SAT_BAND = 32.0                     # |z| beyond which f32 sigmoid is exactly 0 / 1
N_PARAMS = 23                       # w1(8) b1(4) w2(4) b2(1) state(1) fast-consts(5)


def _sig(z):
    # Single-EUP-op sigmoid (tanh form); exact 0/1 at saturation.
    return 0.5 * jnp.tanh(0.5 * z) + 0.5


def _mlp_and_transition(x_ref, p_ref):
    """Tiny 2->4->1 MLP + transition on [1, TILE] lane vectors (scalar weights)."""
    x0 = x_ref[0:1, :]                               # [1, TILE]
    x1 = x_ref[1:2, :]                               # [1, TILE]
    state = p_ref[17]
    pre = p_ref[16]                                  # b2
    for j in range(4):
        h_j = _sig(x0 * p_ref[j] + x1 * p_ref[4 + j] + p_ref[8 + j])
        pre = pre + h_j * p_ref[12 + j]
    y_hat_ = _sig(pre)                               # [1, TILE]
    target_ = state + SCALE * _sig((x0 - COUNT_NB_GREATER_THAN) * 10000.0)
    return y_hat_, target_, state


def _fast_kernel(x_ref, p_ref, o_ref):
    """Saturation-count stop_grad (uniform offsets, large constant scale)."""
    y_hat_, target_, state = _mlp_and_transition(x_ref, p_ref)
    off0 = p_ref[18]
    inv_step = p_ref[19]
    step = p_ref[20]
    sg_scale = p_ref[21]
    k_real = p_ref[22]

    def stop_grad(v):
        t = (v - off0) * inv_step                    # grid coordinate of v
        # Offsets with k <= floor(t - 0.5) have |z| >= scale*step/2 >= SAT_BAND
        # -> sigmoid rounds to exactly 1.0 in f32.
        count1 = jnp.clip(jnp.floor(t - 0.5) + 1.0, 0.0, k_real)
        # The only offset that can be unsaturated is the nearest one.
        k0 = jnp.floor(t + 0.5)
        use = (k0 >= count1) & (k0 >= 0.0) & (k0 <= k_real - 1.0)
        band = jnp.where(use, _sig((v - (off0 + k0 * step)) * sg_scale), 0.0)
        # Remaining offsets have z <= -SAT_BAND (each < 1.5e-14) and are dropped.
        return count1 + band + (SMALLEST_INT - 1.0)

    y_hat = stop_grad(y_hat_)
    target = stop_grad(target_)
    o_ref[...] = y_hat + (target - state) * DELTA_SCALE        # [1, TILE] lane-dense


def _dense_kernel(x_ref, p_ref, sgs_ref, noff_ref, o_ref):
    """Exact dense stop_grad slab (arbitrary offsets / scales), K-chunked."""
    y_hat_, target_, state = _mlp_and_transition(x_ref, p_ref)
    v = jnp.concatenate([y_hat_, target_], axis=1)             # [1, 2*TILE]

    k_chunk, n_chunks = sgs_ref.shape                          # static
    acc = jnp.zeros_like(v)                                    # [1, 2*TILE] f32
    for c in range(n_chunks):                                  # fully unrolled
        # [K_CHUNK, 1] chunk column broadcast against [1, 2*TILE] values:
        # one mul + one add (VPU) + one tanh (EUP) per element.
        z = v * sgs_ref[:, c:c + 1] + noff_ref[:, c:c + 1]     # [K_CHUNK, 2*TILE]
        acc = acc + jnp.sum(jnp.tanh(z), axis=0, keepdims=True)

    # sigmoid = 0.5*tanh + 0.5, with the +0.5 per lane hoisted (pad lanes give
    # tanh == -1 and cancel exactly).
    s = 0.5 * acc + (0.5 * (k_chunk * n_chunks) + SMALLEST_INT - 1.0)

    tile = o_ref.shape[1]
    y_hat = s[:, :tile]
    target = s[:, tile:]
    o_ref[...] = y_hat + (target - state) * DELTA_SCALE        # [1, TILE] lane-dense


def pack_state_machine(w1, b1, w2, b2, state, offsets, sg_scale):
    """One-time packing (concrete values, outside jit) of params + stop-grad tables.

    Returns (params_smem[23], sgs2d, noff2d, fast_ok).
    """
    offsets = jnp.asarray(offsets, jnp.float32).reshape(-1)
    sg_scale = jnp.asarray(sg_scale, jnp.float32).reshape(-1)
    k_real = int(offsets.shape[0])

    off_np = np.asarray(offsets)
    sc_np = np.asarray(sg_scale)

    # Fast-path gate: exactly uniform ascending grid, one constant scale, and the
    # scale large enough that any offset >= half a grid step away is saturated.
    fast_ok = False
    step = 1.0
    if k_real > 1:
        step = float(np.float32(off_np[1]) - np.float32(off_np[0]))
        if step > 0.0:
            grid = (np.float32(off_np[0])
                    + np.float32(step) * np.arange(k_real, dtype=np.float32))
            fast_ok = (bool(np.array_equal(off_np, grid))
                       and bool(np.all(sc_np == sc_np[0]))
                       and float(sc_np[0]) * step >= 2.0 * SAT_BAND)

    if fast_ok:
        fast_consts = jnp.array(
            [float(off_np[0]), 1.0 / step, step, float(sc_np[0]), float(k_real)],
            jnp.float32)
    else:
        fast_consts = jnp.zeros((5,), jnp.float32)

    params = jnp.concatenate([
        jnp.reshape(jnp.asarray(w1, jnp.float32), (-1,)),   # 8: w1[i,j] at 4*i+j  (y = x @ w1 + b1)
        jnp.reshape(jnp.asarray(b1, jnp.float32), (-1,)),   # 4
        jnp.reshape(jnp.asarray(w2, jnp.float32), (-1,)),   # 4: w2[:,0]
        jnp.reshape(jnp.asarray(b2, jnp.float32), (-1,)),   # 1
        jnp.reshape(jnp.asarray(state, jnp.float32), (1,)), # 1
        fast_consts,                                        # 5
    ]).astype(jnp.float32)
    assert params.shape[0] == N_PARAMS

    # Dense-path tables with the sigmoid affine constant-folded.
    k_pad = ((k_real + K_CHUNK - 1) // K_CHUNK) * K_CHUNK
    n_chunks = k_pad // K_CHUNK
    half_s = jnp.zeros((k_pad,), jnp.float32).at[:k_real].set(0.5 * sg_scale)
    noff = jnp.full((k_pad,), -1e30, jnp.float32).at[:k_real].set(
        -0.5 * offsets * sg_scale)
    sgs2d = half_s.reshape(n_chunks, K_CHUNK).T              # [K_CHUNK, N_CHUNKS]
    noff2d = noff.reshape(n_chunks, K_CHUNK).T
    return params, sgs2d, noff2d, fast_ok


def _choose_tile(n):
    # Lane-aligned tiles (multiples of 128).  <=256 keeps >=2 grid steps for
    # n > 256 (both v7x TensorCores busy) and per-step temporaries tiny (v5e).
    return 128 if n <= 256 else 256


def state_machine_forward(x, packed, *, tile=None, force_dense=False):
    """x: [N, 2] -> [N, 1] f32, same semantics as StateMachine.forward."""
    params, sgs2d, noff2d, fast_ok = packed
    n = x.shape[0]
    tile = tile or _choose_tile(n)
    assert tile % 128 == 0, tile
    n_pad = ((n + tile - 1) // tile) * tile

    # Lane-major input: [2, n_pad] (padding columns are harmless and discarded).
    xt = jnp.zeros((2, n_pad), jnp.float32).at[:, :n].set(x.astype(jnp.float32).T)

    grid = (n_pad // tile,)
    x_spec = pl.BlockSpec((2, tile), lambda i: (0, i))
    p_spec = pl.BlockSpec(memory_space=pltpu.MemorySpace.SMEM)
    o_spec = pl.BlockSpec((1, tile), lambda i: (0, i))
    out_shape = jax.ShapeDtypeStruct((1, n_pad), jnp.float32)
    cparams = pltpu.CompilerParams(dimension_semantics=("parallel",))

    if fast_ok and not force_dense:
        out = pl.pallas_call(
            _fast_kernel,
            out_shape=out_shape,
            grid=grid,
            in_specs=[x_spec, p_spec],
            out_specs=o_spec,
            compiler_params=cparams,
        )(xt, params)
    else:
        t_spec = pl.BlockSpec(sgs2d.shape, lambda i: (0, 0))
        out = pl.pallas_call(
            _dense_kernel,
            out_shape=out_shape,
            grid=grid,
            in_specs=[x_spec, p_spec, t_spec, t_spec],
            out_specs=o_spec,
            compiler_params=cparams,
        )(xt, params, sgs2d, noff2d)

    return out[0, :n][:, None]                                 # [N, 1]


def reference_forward(x, w1, b1, w2, b2, state, offsets, sg_scale):
    """Plain-JAX mirror of the torch module, for correctness checking."""
    def stop_grad(v):
        return (jnp.sum(jax.nn.sigmoid((v[..., None] - offsets) * sg_scale), axis=-1)
                + SMALLEST_INT - 1.0)
    h = jax.nn.sigmoid(x @ w1 + b1)
    y_hat_ = jax.nn.sigmoid(h @ w2 + b2)                        # [N, 1]
    y_hat = stop_grad(y_hat_)                                   # [N, 1]
    target_ = state + SCALE * jax.nn.sigmoid((x[:, 0] - COUNT_NB_GREATER_THAN) * 10000.0)
    target = stop_grad(target_)                                 # [N]
    delta = target - state
    return y_hat + delta[:, None] * DELTA_SCALE


if __name__ == "__main__":
    key = jax.random.PRNGKey(0)
    k1, k2, k3, k4, kx = jax.random.split(key, 5)

    N = 48  # matches BATCH_SIZE in the reference script

    # nn.Sequential(Linear(2,4), Sigmoid, Linear(4,1), Sigmoid) + StateMachine state.
    # w1/w2 are stored as [in, out] so forward = x @ w + b.
    w1 = jax.random.normal(k1, (2, 4), jnp.float32) * 0.5
    b1 = jax.random.normal(k2, (4,), jnp.float32) * 0.1
    w2 = jax.random.normal(k3, (4, 1), jnp.float32) * 0.5
    b2 = jax.random.normal(k4, (1,), jnp.float32) * 0.1
    state = jnp.zeros((), jnp.float32)
    offsets = jnp.arange(SMALLEST_INT - 0.5, BIGGEST_INT + 0.5, dtype=jnp.float32)  # [2001]
    sg_scale = jnp.ones_like(offsets) * LARGE

    x = jax.random.normal(kx, (N, 2), jnp.float32)

    # Constant prep done once, outside the hot path.
    packed = pack_state_machine(w1, b1, w2, b2, state, offsets, sg_scale)

    ref = reference_forward(x, w1, b1, w2, b2, state, offsets, sg_scale)

    # Default path (saturation-count shortcut for the canonical uniform-grid params).
    out = jax.block_until_ready(state_machine_forward(x, packed))
    assert out.shape == (N, 1)
    assert jnp.allclose(out, ref, atol=2e-3, rtol=1e-4), (out, ref)

    # Dense fallback path (exact semantics for arbitrary offsets / scales).
    out_dense = jax.block_until_ready(state_machine_forward(x, packed, force_dense=True))
    assert jnp.allclose(out_dense, ref, atol=2e-3, rtol=1e-4), (out_dense, ref)

    print("KERNEL_OK")
</pallas_src>

<mosaic_0001>
module attributes {stable_mosaic.version = 11 : i64} {
  func.func @_fast_kernel(%arg0: i32, %arg1: memref<2x128xf32, #tpu.memory_space<vmem>>, %arg2: memref<23xf32, #tpu.memory_space<smem>>, %arg3: memref<1x128xf32, #tpu.memory_space<vmem>>) attributes {dimension_semantics = [#tpu.dimension_semantics<parallel>], iteration_bounds = array<i64: 1>, scalar_prefetch = 0 : i64, scratch_operands = 0 : i64, tpu.core_type = #tpu.core_type<tc>, window_params = [{transform_indices = @transform_0, window_bounds = array<i64: 2, 128>}, {transform_indices = @transform_1, window_bounds = array<i64: 23>}, {transform_indices = @transform_2, window_bounds = array<i64: 1, 128>}]} {
    %c0 = arith.constant 0 : index
    %c0_0 = arith.constant 0 : index
    %0 = vector.load %arg1[%c0, %c0_0] : memref<2x128xf32, #tpu.memory_space<vmem>>, vector<1x128xf32>
    %c1 = arith.constant 1 : index
    %c0_1 = arith.constant 0 : index
    %1 = vector.load %arg1[%c1, %c0_1] : memref<2x128xf32, #tpu.memory_space<vmem>>, vector<1x128xf32>
    %c17 = arith.constant 17 : index
    %2 = memref.load %arg2[%c17] : memref<23xf32, #tpu.memory_space<smem>>
    %c16 = arith.constant 16 : index
    %3 = memref.load %arg2[%c16] : memref<23xf32, #tpu.memory_space<smem>>
    %c0_2 = arith.constant 0 : index
    %4 = memref.load %arg2[%c0_2] : memref<23xf32, #tpu.memory_space<smem>>
    %5 = vector.broadcast %4 : f32 to vector<1x128xf32>
    %6 = arith.mulf %0, %5 : vector<1x128xf32>
    %c4 = arith.constant 4 : index
    %7 = memref.load %arg2[%c4] : memref<23xf32, #tpu.memory_space<smem>>
    %8 = vector.broadcast %7 : f32 to vector<1x128xf32>
    %9 = arith.mulf %1, %8 : vector<1x128xf32>
    %10 = arith.addf %6, %9 : vector<1x128xf32>
    %c8 = arith.constant 8 : index
    %11 = memref.load %arg2[%c8] : memref<23xf32, #tpu.memory_space<smem>>
    %12 = vector.broadcast %11 : f32 to vector<1x128xf32>
    %13 = arith.addf %10, %12 : vector<1x128xf32>
    %cst = arith.constant 5.000000e-01 : f32
    %14 = vector.broadcast %cst : f32 to vector<1x128xf32>
    %15 = arith.mulf %14, %13 : vector<1x128xf32>
    %16 = math.tanh %15 : vector<1x128xf32>
    %cst_3 = arith.constant 5.000000e-01 : f32
    %17 = vector.broadcast %cst_3 : f32 to vector<1x128xf32>
    %18 = arith.mulf %17, %16 : vector<1x128xf32>
    %cst_4 = arith.constant 5.000000e-01 : f32
    %19 = vector.broadcast %cst_4 : f32 to vector<1x128xf32>
    %20 = arith.addf %18, %19 : vector<1x128xf32>
    %c12 = arith.constant 12 : index
    %21 = memref.load %arg2[%c12] : memref<23xf32, #tpu.memory_space<smem>>
    %22 = vector.broadcast %21 : f32 to vector<1x128xf32>
    %23 = arith.mulf %20, %22 : vector<1x128xf32>
    %24 = vector.broadcast %3 : f32 to vector<1x128xf32>
    %25 = arith.addf %24, %23 : vector<1x128xf32>
    %c1_5 = arith.constant 1 : index
    %26 = memref.load %arg2[%c1_5] : memref<23xf32, #tpu.memory_space<smem>>
    %27 = vector.broadcast %26 : f32 to vector<1x128xf32>
    %28 = arith.mulf %0, %27 : vector<1x128xf32>
    %c5 = arith.constant 5 : index
    %29 = memref.load %arg2[%c5] : memref<23xf32, #tpu.memory_space<smem>>
    %30 = vector.broadcast %29 : f32 to vector<1x128xf32>
    %31 = arith.mulf %1, %30 : vector<1x128xf32>
    %32 = arith.addf %28, %31 : vector<1x128xf32>
    %c9 = arith.constant 9 : index
    %33 = memref.load %arg2[%c9] : memref<23xf32, #tpu.memory_space<smem>>
    %34 = vector.broadcast %33 : f32 to vector<1x128xf32>
    %35 = arith.addf %32, %34 : vector<1x128xf32>
    %cst_6 = arith.constant 5.000000e-01 : f32
    %36 = vector.broadcast %cst_6 : f32 to vector<1x128xf32>
    %37 = arith.mulf %36, %35 : vector<1x128xf32>
    %38 = math.tanh %37 : vector<1x128xf32>
    %cst_7 = arith.constant 5.000000e-01 : f32
    %39 = vector.broadcast %cst_7 : f32 to vector<1x128xf32>
    %40 = arith.mulf %39, %38 : vector<1x128xf32>
    %cst_8 = arith.constant 5.000000e-01 : f32
    %41 = vector.broadcast %cst_8 : f32 to vector<1x128xf32>
    %42 = arith.addf %40, %41 : vector<1x128xf32>
    %c13 = arith.constant 13 : index
    %43 = memref.load %arg2[%c13] : memref<23xf32, #tpu.memory_space<smem>>
    %44 = vector.broadcast %43 : f32 to vector<1x128xf32>
    %45 = arith.mulf %42, %44 : vector<1x128xf32>
    %46 = arith.addf %25, %45 : vector<1x128xf32>
    %c2 = arith.constant 2 : index
    %47 = memref.load %arg2[%c2] : memref<23xf32, #tpu.memory_space<smem>>
    %48 = vector.broadcast %47 : f32 to vector<1x128xf32>
    %49 = arith.mulf %0, %48 : vector<1x128xf32>
    %c6 = arith.constant 6 : index
    %50 = memref.load %arg2[%c6] : memref<23xf32, #tpu.memory_space<smem>>
    %51 = vector.broadcast %50 : f32 to vector<1x128xf32>
    %52 = arith.mulf %1, %51 : vector<1x128xf32>
    %53 = arith.addf %49, %52 : vector<1x128xf32>
    %c10 = arith.constant 10 : index
    %54 = memref.load %arg2[%c10] : memref<23xf32, #tpu.memory_space<smem>>
    %55 = vector.broadcast %54 : f32 to vector<1x128xf32>
    %56 = arith.addf %53, %55 : vector<1x128xf32>
    %cst_9 = arith.constant 5.000000e-01 : f32
    %57 = vector.broadcast %cst_9 : f32 to vector<1x128xf32>
    %58 = arith.mulf %57, %56 : vector<1x128xf32>
    %59 = math.tanh %58 : vector<1x128xf32>
    %cst_10 = arith.constant 5.000000e-01 : f32
    %60 = vector.broadcast %cst_10 : f32 to vector<1x128xf32>
    %61 = arith.mulf %60, %59 : vector<1x128xf32>
    %cst_11 = arith.constant 5.000000e-01 : f32
    %62 = vector.broadcast %cst_11 : f32 to vector<1x128xf32>
    %63 = arith.addf %61, %62 : vector<1x128xf32>
    %c14 = arith.constant 14 : index
    %64 = memref.load %arg2[%c14] : memref<23xf32, #tpu.memory_space<smem>>
    %65 = vector.broadcast %64 : f32 to vector<1x128xf32>
    %66 = arith.mulf %63, %65 : vector<1x128xf32>
    %67 = arith.addf %46, %66 : vector<1x128xf32>
    %c3 = arith.constant 3 : index
    %68 = memref.load %arg2[%c3] : memref<23xf32, #tpu.memory_space<smem>>
    %69 = vector.broadcast %68 : f32 to vector<1x128xf32>
    %70 = arith.mulf %0, %69 : vector<1x128xf32>
    %c7 = arith.constant 7 : index
    %71 = memref.load %arg2[%c7] : memref<23xf32, #tpu.memory_space<smem>>
    %72 = vector.broadcast %71 : f32 to vector<1x128xf32>
    %73 = arith.mulf %1, %72 : vector<1x128xf32>
    %74 = arith.addf %70, %73 : vector<1x128xf32>
    %c11 = arith.constant 11 : index
    %75 = memref.load %arg2[%c11] : memref<23xf32, #tpu.memory_space<smem>>
    %76 = vector.broadcast %75 : f32 to vector<1x128xf32>
    %77 = arith.addf %74, %76 : vector<1x128xf32>
    %cst_12 = arith.constant 5.000000e-01 : f32
    %78 = vector.broadcast %cst_12 : f32 to vector<1x128xf32>
    %79 = arith.mulf %78, %77 : vector<1x128xf32>
    %80 = math.tanh %79 : vector<1x128xf32>
    %cst_13 = arith.constant 5.000000e-01 : f32
    %81 = vector.broadcast %cst_13 : f32 to vector<1x128xf32>
    %82 = arith.mulf %81, %80 : vector<1x128xf32>
    %cst_14 = arith.constant 5.000000e-01 : f32
    %83 = vector.broadcast %cst_14 : f32 to vector<1x128xf32>
    %84 = arith.addf %82, %83 : vector<1x128xf32>
    %c15 = arith.constant 15 : index
    %85 = memref.load %arg2[%c15] : memref<23xf32, #tpu.memory_space<smem>>
    %86 = vector.broadcast %85 : f32 to vector<1x128xf32>
    %87 = arith.mulf %84, %86 : vector<1x128xf32>
    %88 = arith.addf %67, %87 : vector<1x128xf32>
    %cst_15 = arith.constant 5.000000e-01 : f32
    %89 = vector.broadcast %cst_15 : f32 to vector<1x128xf32>
    %90 = arith.mulf %89, %88 : vector<1x128xf32>
    %91 = math.tanh %90 : vector<1x128xf32>
    %cst_16 = arith.constant 5.000000e-01 : f32
    %92 = vector.broadcast %cst_16 : f32 to vector<1x128xf32>
    %93 = arith.mulf %92, %91 : vector<1x128xf32>
    %cst_17 = arith.constant 5.000000e-01 : f32
    %94 = vector.broadcast %cst_17 : f32 to vector<1x128xf32>
    %95 = arith.addf %93, %94 : vector<1x128xf32>
    %cst_18 = arith.constant 3.000000e+00 : f32
    %96 = vector.broadcast %cst_18 : f32 to vector<1x128xf32>
    %97 = arith.subf %0, %96 : vector<1x128xf32>
    %cst_19 = arith.constant 1.000000e+04 : f32
    %98 = vector.broadcast %cst_19 : f32 to vector<1x128xf32>
    %99 = arith.mulf %97, %98 : vector<1x128xf32>
    %cst_20 = arith.constant 5.000000e-01 : f32
    %100 = vector.broadcast %cst_20 : f32 to vector<1x128xf32>
    %101 = arith.mulf %100, %99 : vector<1x128xf32>
    %102 = math.tanh %101 : vector<1x128xf32>
    %cst_21 = arith.constant 5.000000e-01 : f32
    %103 = vector.broadcast %cst_21 : f32 to vector<1x128xf32>
    %104 = arith.mulf %103, %102 : vector<1x128xf32>
    %cst_22 = arith.constant 5.000000e-01 : f32
    %105 = vector.broadcast %cst_22 : f32 to vector<1x128xf32>
    %106 = arith.addf %104, %105 : vector<1x128xf32>
    %cst_23 = arith.constant 4.800000e+01 : f32
    %107 = vector.broadcast %cst_23 : f32 to vector<1x128xf32>
    %108 = arith.mulf %107, %106 : vector<1x128xf32>
    %109 = vector.broadcast %2 : f32 to vector<1x128xf32>
    %110 = arith.addf %109, %108 : vector<1x128xf32>
    %c18 = arith.constant 18 : index
    %111 = memref.load %arg2[%c18] : memref<23xf32, #tpu.memory_space<smem>>
    %c19 = arith.constant 19 : index
    %112 = memref.load %arg2[%c19] : memref<23xf32, #tpu.memory_space<smem>>
    %c20 = arith.constant 20 : index
    %113 = memref.load %arg2[%c20] : memref<23xf32, #tpu.memory_space<smem>>
    %c21 = arith.constant 21 : index
    %114 = memref.load %arg2[%c21] : memref<23xf32, #tpu.memory_space<smem>>
    %c22 = arith.constant 22 : index
    %115 = memref.load %arg2[%c22] : memref<23xf32, #tpu.memory_space<smem>>
    %116 = vector.broadcast %111 : f32 to vector<1x128xf32>
    %117 = arith.subf %95, %116 : vector<1x128xf32>
    %118 = vector.broadcast %112 : f32 to vector<1x128xf32>
    %119 = arith.mulf %117, %118 : vector<1x128xf32>
    %cst_24 = arith.constant 5.000000e-01 : f32
    %120 = vector.broadcast %cst_24 : f32 to vector<1x128xf32>
    %121 = arith.subf %119, %120 : vector<1x128xf32>
    %122 = math.floor %121 : vector<1x128xf32>
    %cst_25 = arith.constant 1.000000e+00 : f32
    %123 = vector.broadcast %cst_25 : f32 to vector<1x128xf32>
    %124 = arith.addf %122, %123 : vector<1x128xf32>
    %cst_26 = arith.constant 0.000000e+00 : f32
    %125 = vector.broadcast %cst_26 : f32 to vector<1x128xf32>
    %126 = arith.maximumf %125, %124 : vector<1x128xf32>
    %127 = vector.broadcast %115 : f32 to vector<1x128xf32>
    %128 = arith.minimumf %127, %126 : vector<1x128xf32>
    %cst_27 = arith.constant 5.000000e-01 : f32
    %129 = vector.broadcast %cst_27 : f32 to vector<1x128xf32>
    %130 = arith.addf %119, %129 : vector<1x128xf32>
    %131 = math.floor %130 : vector<1x128xf32>
    %132 = arith.cmpf oge, %131, %128 : vector<1x128xf32>
    %cst_28 = arith.constant 0.000000e+00 : f32
    %133 = vector.broadcast %cst_28 : f32 to vector<1x128xf32>
    %134 = arith.cmpf oge, %131, %133 : vector<1x128xf32>
    %135 = arith.andi %132, %134 : vector<1x128xi1>
    %cst_29 = arith.constant 1.000000e+00 : f32
    %136 = arith.subf %115, %cst_29 : f32
    %137 = vector.broadcast %136 : f32 to vector<1x128xf32>
    %138 = arith.cmpf ole, %131, %137 : vector<1x128xf32>
    %139 = arith.andi %135, %138 : vector<1x128xi1>
    %140 = vector.broadcast %113 : f32 to vector<1x128xf32>
    %141 = arith.mulf %131, %140 : vector<1x128xf32>
    %142 = vector.broadcast %111 : f32 to vector<1x128xf32>
    %143 = arith.addf %142, %141 : vector<1x128xf32>
    %144 = arith.subf %95, %143 : vector<1x128xf32>
    %145 = vector.broadcast %114 : f32 to vector<1x128xf32>
    %146 = arith.mulf %144, %145 : vector<1x128xf32>
    %cst_30 = arith.constant 5.000000e-01 : f32
    %147 = vector.broadcast %cst_30 : f32 to vector<1x128xf32>
    %148 = arith.mulf %147, %146 : vector<1x128xf32>
    %149 = math.tanh %148 : vector<1x128xf32>
    %cst_31 = arith.constant 5.000000e-01 : f32
    %150 = vector.broadcast %cst_31 : f32 to vector<1x128xf32>
    %151 = arith.mulf %150, %149 : vector<1x128xf32>
    %cst_32 = arith.constant 5.000000e-01 : f32
    %152 = vector.broadcast %cst_32 : f32 to vector<1x128xf32>
    %153 = arith.addf %151, %152 : vector<1x128xf32>
    %cst_33 = arith.constant 0.000000e+00 : f32
    %154 = vector.broadcast %cst_33 : f32 to vector<1x128xf32>
    %155 = arith.select %139, %153, %154 : vector<1x128xi1>, vector<1x128xf32>
    %156 = arith.addf %128, %155 : vector<1x128xf32>
    %cst_34 = arith.constant -1.001000e+03 : f32
    %157 = vector.broadcast %cst_34 : f32 to vector<1x128xf32>
    %158 = arith.addf %156, %157 : vector<1x128xf32>
    %159 = vector.broadcast %111 : f32 to vector<1x128xf32>
    %160 = arith.subf %110, %159 : vector<1x128xf32>
    %161 = vector.broadcast %112 : f32 to vector<1x128xf32>
    %162 = arith.mulf %160, %161 : vector<1x128xf32>
    %cst_35 = arith.constant 5.000000e-01 : f32
    %163 = vector.broadcast %cst_35 : f32 to vector<1x128xf32>
    %164 = arith.subf %162, %163 : vector<1x128xf32>
    %165 = math.floor %164 : vector<1x128xf32>
    %cst_36 = arith.constant 1.000000e+00 : f32
    %166 = vector.broadcast %cst_36 : f32 to vector<1x128xf32>
    %167 = arith.addf %165, %166 : vector<1x128xf32>
    %cst_37 = arith.constant 0.000000e+00 : f32
    %168 = vector.broadcast %cst_37 : f32 to vector<1x128xf32>
    %169 = arith.maximumf %168, %167 : vector<1x128xf32>
    %170 = vector.broadcast %115 : f32 to vector<1x128xf32>
    %171 = arith.minimumf %170, %169 : vector<1x128xf32>
    %cst_38 = arith.constant 5.000000e-01 : f32
    %172 = vector.broadcast %cst_38 : f32 to vector<1x128xf32>
    %173 = arith.addf %162, %172 : vector<1x128xf32>
    %174 = math.floor %173 : vector<1x128xf32>
    %175 = arith.cmpf oge, %174, %171 : vector<1x128xf32>
    %cst_39 = arith.constant 0.000000e+00 : f32
    %176 = vector.broadcast %cst_39 : f32 to vector<1x128xf32>
    %177 = arith.cmpf oge, %174, %176 : vector<1x128xf32>
    %178 = arith.andi %175, %177 : vector<1x128xi1>
    %cst_40 = arith.constant 1.000000e+00 : f32
    %179 = arith.subf %115, %cst_40 : f32
    %180 = vector.broadcast %179 : f32 to vector<1x128xf32>
    %181 = arith.cmpf ole, %174, %180 : vector<1x128xf32>
    %182 = arith.andi %178, %181 : vector<1x128xi1>
    %183 = vector.broadcast %113 : f32 to vector<1x128xf32>
    %184 = arith.mulf %174, %183 : vector<1x128xf32>
    %185 = vector.broadcast %111 : f32 to vector<1x128xf32>
    %186 = arith.addf %185, %184 : vector<1x128xf32>
    %187 = arith.subf %110, %186 : vector<1x128xf32>
    %188 = vector.broadcast %114 : f32 to vector<1x128xf32>
    %189 = arith.mulf %187, %188 : vector<1x128xf32>
    %cst_41 = arith.constant 5.000000e-01 : f32
    %190 = vector.broadcast %cst_41 : f32 to vector<1x128xf32>
    %191 = arith.mulf %190, %189 : vector<1x128xf32>
    %192 = math.tanh %191 : vector<1x128xf32>
    %cst_42 = arith.constant 5.000000e-01 : f32
    %193 = vector.broadcast %cst_42 : f32 to vector<1x128xf32>
    %194 = arith.mulf %193, %192 : vector<1x128xf32>
    %cst_43 = arith.constant 5.000000e-01 : f32
    %195 = vector.broadcast %cst_43 : f32 to vector<1x128xf32>
    %196 = arith.addf %194, %195 : vector<1x128xf32>
    %cst_44 = arith.constant 0.000000e+00 : f32
    %197 = vector.broadcast %cst_44 : f32 to vector<1x128xf32>
    %198 = arith.select %182, %196, %197 : vector<1x128xi1>, vector<1x128xf32>
    %199 = arith.addf %171, %198 : vector<1x128xf32>
    %cst_45 = arith.constant -1.001000e+03 : f32
    %200 = vector.broadcast %cst_45 : f32 to vector<1x128xf32>
    %201 = arith.addf %199, %200 : vector<1x128xf32>
    %202 = vector.broadcast %2 : f32 to vector<1x128xf32>
    %203 = arith.subf %201, %202 : vector<1x128xf32>
    %cst_46 = arith.constant 1.29099441 : f32
    %204 = vector.broadcast %cst_46 : f32 to vector<1x128xf32>
    %205 = arith.mulf %203, %204 : vector<1x128xf32>
    %206 = arith.addf %158, %205 : vector<1x128xf32>
    %c0_47 = arith.constant 0 : index
    %c0_48 = arith.constant 0 : index
    %207 = vector.load %arg3[%c0_47, %c0_48] : memref<1x128xf32, #tpu.memory_space<vmem>>, vector<1x128xf32>
    tpu.vector_store %arg3[%c0_47, %c0_48], %206 {strides = array<i32>} : memref<1x128xf32, #tpu.memory_space<vmem>>, vector<1x128xf32>,
    return
  }
  func.func @transform_0(%arg0: i32) -> (i32, i32) {
    %c0_i32 = arith.constant 0 : i32
    %c0_i32_0 = arith.constant 0 : i32
    return %c0_i32, %arg0 : i32, i32
  }
  func.func @transform_1(%arg0: i32) -> i32 {
    %c0_i32 = arith.constant 0 : i32
    %c0_i32_0 = arith.constant 0 : i32
    return %c0_i32 : i32
  }
  func.func @transform_2(%arg0: i32) -> (i32, i32) {
    %c0_i32 = arith.constant 0 : i32
    %c0_i32_0 = arith.constant 0 : i32
    return %c0_i32, %arg0 : i32, i32
  }
}

</mosaic_0001>

<bundles_post_ra>
// kernel: tpu_custom_call.1
= control target key start
LH: loop header
LB: loop body
LE: loop exit
PB: predicated region body
PF: predicated region fallthrough
CT: control target
= control target key end

     0   :  { %7 = vsyncpa [#allocation3], 0  ;;  %s392_s0 = inlined_call_operand.hbm [shape: f32[2,128], index: 0, kind: input, shape index: {}]   ;;  %s393_s1 = inlined_call_operand.hbm [shape: f32[23], index: 1, kind: input, shape index: {}]   ;;  %s394_s2 = inlined_call_operand.hbm [shape: f32[1,128], index: 2, kind: output, shape index: {}]  }
   0x1   :  { %8 = vsyncpa [#allocation5], 0 }
   0x2   :  { %9 = vsyncpa [#allocation4], 0  ;;  %s15_s11 = sshll.u32 %s392_s0, 4  ;;  %s324_s12 = smov [#allocation2]   ;;  %s16_s11 = int_to_ptr.hbm [resolvable:$true] %s15_s11 }
   0x3   :  { %s17_s13 = sshll.u32 %s324_s12, 4  ;;  %s26_s16 = sshll.u32 %s393_s1, 4  ;;  %s18_s13 = int_to_ptr.vmem [resolvable:$true] %s17_s13  ;;  %s27_s16 = int_to_ptr.hbm [resolvable:$true] %s26_s16 }
   0x4   :  { %20 = dma.hbm_to_vmem [thread:$0]  %s16_s11, 32, %s18_s13, [#allocation3]  }
   0x5   :  { %s325_s17 = smov [#allocation6]  }
   0x6   :  { %29 = dma.hbm_to_smem %s27_s16, 16, %s325_s17, [#allocation5]  }
   0x7   :  { %318 = dma.done.wait [#allocation3], 32  }
   0x8   :  { %319 = vsyncadd [#allocation3], 4294967264 }
   0x9   :  { %320 = dma.done.wait [#allocation5], 16  }
   0xa   :  { %321 = vsyncadd [#allocation5], 4294967280 }
   0xb   :  { %38 = sfence }
   0xc   :  { %v39_v0 = vld [vmem:[#allocation2] sm:$0x1]  ;;  %s43_s0 = sld [smem:[#allocation6]]  ;;  %v40_v4 = vld [vmem:[#allocation2 + $0x1] sm:$0x1]  ;;  %s326_s12 = smov [#allocation7]  }
   0xd   :  { %v230_v1 = vadd.f32 -3.0, %v39_v0  ;;  %s215_s18 = sld [smem:[#allocation6 + $0x4]]  ;;  %s200_s13 = sshll.u32 %s326_s12, 4  ;;  %s201_s13 = int_to_ptr.vmem [resolvable:$true] %s200_s13 }
   0xe   :  { %s216_s19 = sld [smem:[#allocation6 + $0x8]]  ;;  %s202_s16 = sshll.u32 %s394_s2, 4  ;;  %s203_s16 = int_to_ptr.hbm [resolvable:$true] %s202_s16 }
   0xf   :  { %v121_v2 = vmul.f32 10000.0, %v230_v1  ;;  %s218_s20 = sld [smem:[#allocation6 + $0x1]] }
  0x10   :  { %s219_s21 = sld [smem:[#allocation6 + $0x5]] }
  0x11   :  { %v122_v3 = vmul.f32 0.5, %v121_v2  ;;  %s220_s1 = sld [smem:[#allocation6 + $0x9]] }
  0x12   :  { %v44_v5 = vstv %s43_s0  ;;  %s348_s22 = sld [smem:[#allocation6 + $0x11]] }
  0x13   :  { %242 = vtanh.f32 %v122_v3  ;;  %v45_v6 = vmul.f32 %v44_v5, %v39_v0  ;;  %v47_v7 = vstv %s215_s18  ;;  %s222_s23 = sld [smem:[#allocation6 + $0x2]] }
  0x14   :  { %v48_v8 = vmul.f32 %v47_v7, %v40_v4  ;;  %v51_v9 = vstv %s216_s19  ;;  %s223_s24 = sld [smem:[#allocation6 + $0x6]] }
  0x15   :  { %v63_v11 = vstv %s218_s20  ;;  %s350_s25 = sld [smem:[#allocation6 + $0xa]] }
  0x16   :  { %v49_v10 = vadd.f32 %v48_v8, %v45_v6  ;;  %v64_v13 = vmul.f32 %v63_v11, %v39_v0  ;;  %v66_v14 = vstv %s219_s21  ;;  %s226_s26 = sld [smem:[#allocation6 + $0x3]] }
  0x17   :  { %v67_v16 = vmul.f32 %v66_v14, %v40_v4  ;;  %v70_v18 = vstv %s220_s1  ;;  %s227_s27 = sld [smem:[#allocation6 + $0x7]] }
  0x18   :  { %v52_v15 = vadd.f32 %v51_v9, %v49_v10  ;;  %s352_s28 = sld [smem:[#allocation6 + $0xb]]  ;;  %v127_v29 = vstv %s348_s22 }
  0x19   :  { %v243_v12 = vpop.eup %242  ;;  %v68_v20 = vadd.f32 %v67_v16, %v64_v13  ;;  %v81_v21 = vstv %s222_s23  ;;  %s354_s29 = sld [smem:[#allocation6 + $0xc]] }
  0x1a   :  { %v124_v17 = vmul.f32 0.5, %v243_v12  ;;  %v53_v19 = vmul.f32 0.5, %v52_v15  ;;  %v82_v23 = vmul.f32 %v81_v21, %v39_v0  ;;  %v84_v24 = vstv %s223_s24  ;;  %s231_s30 = sld [smem:[#allocation6 + $0x12]] }
  0x1b   :  { %v71_v25 = vadd.f32 %v70_v18, %v68_v20  ;;  %v85_v26 = vmul.f32 %v84_v24, %v40_v4  ;;  %v88_v27 = vstv %s350_s25  ;;  %s358_s3 = sld [smem:[#allocation6 + $0x13]] }
  0x1c   :  { %v125_v22 = vadd.f32 0.5, %v124_v17  ;;  %244 = vtanh.f32 %v53_v19  ;;  %s360_s4 = sld [smem:[#allocation6 + $0x10]]  ;;  %v99_v32 = vstv %s226_s26 }
  0x1d   :  { %v72_v30 = vmul.f32 0.5, %v71_v25  ;;  %v86_v31 = vadd.f32 %v85_v26, %v82_v23  ;;  %v100_v33 = vmul.f32 %v99_v32, %v39_v0  ;;  %v102_v34 = vstv %s227_s27  ;;  %s364_s5 = sld [smem:[#allocation6 + $0xd]] }
  0x1e   :  { %v126_v28 = vmul.f32 48.0, %v125_v22  ;;  %v103_v37 = vmul.f32 %v102_v34, %v40_v4  ;;  %v106_v38 = vstv %s352_s28  ;;  %s369_s6 = sld [smem:[#allocation6 + $0x14]] }
  0x1f   :  { %246 = vtanh.f32 %v72_v30  ;;  %v89_v36 = vadd.f32 %v88_v27, %v86_v31  ;;  %v58_v46 = vstv %s354_s29  ;;  %s225_s7 = sld [smem:[#allocation6 + $0xe]] }
  0x20   :  { %v128_v35 = vadd.f32 %v127_v29, %v126_v28  ;;  %v104_v41 = vadd.f32 %v103_v37, %v100_v33  ;;  %v367_v42 = vstv %s231_s30  ;;  %s229_s8 = sld [smem:[#allocation6 + $0xf]] }
  0x21   :  { %v90_v40 = vmul.f32 0.5, %v89_v36  ;;  %v136_v44 = vstv %s358_s3  ;;  %s377_s9 = sld [smem:[#allocation6 + $0x15]] }
  0x22   :  { %v245_v39 = vpop.eup %244  ;;  %v166_v45 = vsub.f32 %v128_v35, %v367_v42  ;;  %v107_v47 = vadd.f32 %v106_v38, %v104_v41  ;;  %v60_v51 = vstv %s360_s4  ;;  %s381_s10 = sld [smem:[#allocation6 + $0x16]] }
  0x23   :  { %v55_v43 = vmul.f32 0.5, %v245_v39  ;;  %248 = vtanh.f32 %v90_v40  ;;  %v77_v56 = vstv %s364_s5 }
  0x24   :  { %v167_v49 = vmul.f32 %v166_v45, %v136_v44  ;;  %v108_v52 = vmul.f32 0.5, %v107_v47  ;;  %v153_v63 = vstv %s369_s6 }
  0x25   :  { %v56_v48 = vadd.f32 0.5, %v55_v43  ;;  %v247_v50 = vpop.eup %246  ;;  %v95_v0 = vstv %s225_s7 }
  0x26   :  { %v74_v54 = vmul.f32 0.5, %v247_v50  ;;  %v173_v55 = vadd.f32 0.5, %v167_v49  ;;  %250 = vtanh.f32 %v108_v52  ;;  %v113_v7 = vstv %s229_s8 }
  0x27   :  { %v59_v53 = vmul.f32 %v58_v46, %v56_v48  ;;  %v238_v13 = vadd.f32 -0.5, %v167_v49  ;;  %v157_v16 = vstv %s377_s9 }
  0x28   :  { %v75_v58 = vadd.f32 0.5, %v74_v54  ;;  %v174_v60 = vfloor.f32 %v173_v55  ;;  %v142_v25 = vstv %s381_s10  ;;  %s237_s11 = sadd.f32 -1.0, %s381_s10 }
  0x29   :  { %v61_v57 = vadd.f32 %v60_v51, %v59_v53  ;;  %v249_v59 = vpop.eup %248  ;;  %v169_v17 = vfloor.f32 %v238_v13 }
  0x2a   :  { %v78_v61 = vmul.f32 %v77_v56, %v75_v58  ;;  %v92_v62 = vmul.f32 0.5, %v249_v59  ;;  %v180_v4 = vmul.f32 %v174_v60, %v153_v63  ;;  %v150_v33 = vstv %s237_s11 }
  0x2b   :  { %v170_v19 = vadd.f32 1.0, %v169_v17  ;;  %vm176_vm1 = vcmp.ge.f32.partialorder %v174_v60, 0.0  ;;  %vm178_vm3 = vcmp.le.f32.partialorder %v174_v60, %v150_v33 }
  0x2c   :  { %v79_v1 = vadd.f32 %v78_v61, %v61_v57  ;;  %v93_v2 = vadd.f32 0.5, %v92_v62  ;;  %v251_v3 = vpop.eup %250  ;;  %v181_v10 = vadd.f32 %v180_v4, %v367_v42 }
  0x2d   :  { %v110_v6 = vmul.f32 0.5, %v251_v3  ;;  %v171_v24 = vmax.f32 %v170_v19, 0.0 }
  0x2e   :  { %v96_v5 = vmul.f32 %v95_v0, %v93_v2  ;;  %v182_v14 = vsub.f32 %v128_v35, %v181_v10 }
  0x2f   :  { %v111_v9 = vadd.f32 0.5, %v110_v6  ;;  %v172_v28 = vmin.f32 %v142_v25, %v171_v24 }
  0x30   :  { %v97_v8 = vadd.f32 %v96_v5, %v79_v1  ;;  %v183_v18 = vmul.f32 %v182_v14, %v157_v16 }
  0x31   :  { %v114_v11 = vmul.f32 %v113_v7, %v111_v9  ;;  %vm175_vm0 = vcmp.ge.f32.partialorder %v174_v60, %v172_v28 }
  0x32   :  { %v184_v20 = vmul.f32 0.5, %v183_v18  ;;  %vm177_vm2 = vmand %vm175_vm0, %vm176_vm1 }
  0x33   :  { %v115_v12 = vadd.f32 %v114_v11, %v97_v8  ;;  %vm179_vm4 = vmand %vm177_vm2, %vm178_vm3 }
  0x35   :  { %v116_v15 = vmul.f32 0.5, %v115_v12 }
  0x37   :  { %252 = vtanh.f32 %v116_v15 }
  0x38   :  { %254 = vtanh.f32 %v184_v20 }
  0x3d   :  { %v253_v21 = vpop.eup %252 }
  0x3e   :  { %v118_v22 = vmul.f32 0.5, %v253_v21  ;;  %v255_v30 = vpop.eup %254 }
  0x3f   :  { %v186_v36 = vmul.f32 0.5, %v255_v30 }
  0x40   :  { %v119_v23 = vadd.f32 0.5, %v118_v22 }
  0x41   :  { %v187_v40 = vadd.f32 0.5, %v186_v36 }
  0x42   :  { %v135_v26 = vsub.f32 %v119_v23, %v367_v42 }
  0x43   :  { %v188_v45 = vsel %vm179_vm4, %v187_v40, 0.0 }
  0x44   :  { %v137_v27 = vmul.f32 %v136_v44, %v135_v26  ;;  %v189_v48 = vadd.f32 %v188_v45, %v172_v28 }
  0x46   :  { %v236_v31 = vadd.f32 -0.5, %v137_v27  ;;  %v144_v32 = vadd.f32 0.5, %v137_v27  ;;  %v190_v49 = vadd.f32 -1001.0, %v189_v48 }
  0x48   :  { %v139_v34 = vfloor.f32 %v236_v31  ;;  %v145_v35 = vfloor.f32 %v144_v32 }
  0x4a   :  { %v140_v37 = vadd.f32 1.0, %v139_v34  ;;  %v154_v38 = vmul.f32 %v153_v63, %v145_v35  ;;  %vm147_vm6 = vcmp.ge.f32.partialorder %v145_v35, 0.0  ;;  %vm151_vm8 = vcmp.le.f32.partialorder %v145_v35, %v150_v33 }
  0x4c   :  { %v155_v39 = vadd.f32 %v154_v38, %v367_v42  ;;  %v141_v41 = vmax.f32 %v140_v37, 0.0  ;;  %v191_v42 = vsub.f32 %v190_v49, %v127_v29 }
  0x4e   :  { %v156_v43 = vsub.f32 %v119_v23, %v155_v39  ;;  %v143_v46 = vmin.f32 %v142_v25, %v141_v41  ;;  %v192_v55 = vmul.f32 1.2909944, %v191_v42 }
  0x50   :  { %v158_v44 = vmul.f32 %v157_v16, %v156_v43  ;;  %vm146_vm5 = vcmp.ge.f32.partialorder %v145_v35, %v143_v46 }
  0x51   :  { %vm148_vm7 = vmand %vm146_vm5, %vm147_vm6 }
  0x52   :  { %v159_v47 = vmul.f32 0.5, %v158_v44  ;;  %vm152_vm9 = vmand %vm148_vm7, %vm151_vm8 }
  0x54   :  { %256 = vtanh.f32 %v159_v47 }
  0x5a   :  { %v257_v50 = vpop.eup %256 }
  0x5b   :  { %v161_v51 = vmul.f32 0.5, %v257_v50 }
  0x5d   :  { %v162_v52 = vadd.f32 0.5, %v161_v51 }
  0x5f   :  { %v163_v53 = vsel %vm152_vm9, %v162_v52, 0.0 }
  0x60   :  { %v164_v54 = vadd.f32 %v163_v53, %v143_v46 }
  0x62   :  { %v165_v56 = vadd.f32 -1001.0, %v164_v54 }
  0x64   :  { %v193_v57 = vadd.f32 %v192_v55, %v165_v56 }
  0x66   :  { %194 = vst [vmem:[#allocation7] sm:$0x1] %v193_v57 }
  0x67   :  { %205 = dma.vmem_to_hbm [thread:$0]  %s201_s13, 16, %s203_s16, [#allocation4]  }
  0x68   :  { %322 = dma.done.wait [#allocation4], 16  }
  0x69   :  { %323 = vsyncadd [#allocation4], 4294967280 }
  0x6a   :  { %210 = vsyncpa [#allocation3], 1 }
  0x6b   :  { %211 = vsyncpa [#allocation4], 1 }
  0x6c   :  { %212 = vsyncpa [#allocation5], 1 }

</bundles_post_ra>
